<compile_context>
chip_gen: v6e
topology: v6e:2x2x1
jax: 0.10.0
libtpu: 0.0.40
codegen_flags: <defaults>
</compile_context>

<pallas_src>
import functools

import jax
import jax.numpy as jnp
from jax.experimental import pallas as pl
from jax.experimental.pallas import tpu as pltpu

PHI = 1.618033988749895
LN_EPS = 1e-5

_NEURON_NAMES = (
    "genesis", "harmony", "validation", "transcendence", "sacred", "wisdom", "unity"
)

# ---------------------------------------------------------------------------
# Kernel 1: elementwise PhiSpiralActivation (bandwidth-bound)
# ---------------------------------------------------------------------------

_LANES = 128
# ~2 MiB f32 tile (4096 x 128).  in+out, double buffered => ~8 MiB pipelined
# VMEM: inside the default scoped limit on every TPU generation (v5e 16 MiB,
# v6e 32 MiB, v7x 32 MiB), so no vmem_limit_bytes override is needed.
_TARGET_BLOCK_ROWS = 4096


def _phi_spiral_kernel(x_ref, o_ref, *, phi, compute_dtype):
    x = x_ref[...].astype(compute_dtype)
    inv_phi = 1.0 / phi
    # sigmoid goes to the EUP (exp); the divide is replaced by an EUP vrcp.
    spiral_factor = jax.nn.sigmoid(x * inv_phi)
    phi_scaling = (x * phi) * pl.reciprocal(1.0 + jnp.abs(x), approx=True)
    o_ref[...] = (spiral_factor * phi_scaling).astype(o_ref.dtype)


def phi_spiral_activation(x: jax.Array, phi: float = PHI) -> jax.Array:
    """Apply the phi-spiral activation elementwise via a Pallas TPU kernel."""
    orig_shape = x.shape
    dtype = x.dtype
    n = x.size

    # bf16 stays bf16 (v6e/v7x have bf16 VPU/EUP: halves HBM bytes + vregs);
    # everything else computes in f32.
    compute_dtype = dtype if dtype == jnp.bfloat16 else jnp.float32

    # Lane-dense 2D slab; pad only if the flattened size is not lane-aligned
    # (at most 127 extra elements, and only then do we slice on the way out).
    flat = x.reshape(-1)
    pad = (-n) % _LANES
    if pad:
        flat = jnp.pad(flat, (0, pad))
    rows = flat.shape[0] // _LANES
    x2d = flat.reshape(rows, _LANES)

    # Whole-array block for small inputs, ~2 MiB tiles for large ones.
    block_rows = rows if rows <= _TARGET_BLOCK_ROWS else _TARGET_BLOCK_ROWS
    grid = (pl.cdiv(rows, block_rows),)

    itemsize = jnp.dtype(dtype).itemsize
    cost = pl.CostEstimate(
        flops=6 * n,
        transcendentals=2 * n,          # sigmoid exp + approx reciprocal
        bytes_accessed=2 * n * itemsize,
    )

    kernel = functools.partial(
        _phi_spiral_kernel, phi=float(phi), compute_dtype=compute_dtype
    )

    out2d = pl.pallas_call(
        kernel,
        out_shape=jax.ShapeDtypeStruct((rows, _LANES), dtype),
        grid=grid,
        in_specs=[pl.BlockSpec((block_rows, _LANES), lambda i: (i, 0))],
        out_specs=pl.BlockSpec((block_rows, _LANES), lambda i: (i, 0)),
        compiler_params=pltpu.CompilerParams(dimension_semantics=("parallel",)),
        cost_estimate=cost,
    )(x2d)

    if pad:
        return out2d.reshape(-1)[:n].reshape(orig_shape)
    return out2d.reshape(orig_shape)


def _phi_spiral_reference(x: jax.Array, phi: float = PHI) -> jax.Array:
    xf = x.astype(jnp.float32)
    y = jax.nn.sigmoid(xf / phi) * (xf * phi / (1.0 + jnp.abs(xf)))
    return y.astype(x.dtype)


# ---------------------------------------------------------------------------
# Kernel 2: fused SevenSacredNeurons forward (inference)
# ---------------------------------------------------------------------------

def _sacred_forward_kernel(
    x_ref, w_in_ref, b_in_ref, w7_ref, b7_ref, w_int_ref, b_int_ref,
    gamma_ref, beta_ref, w_out_ref, b_out_ref,
    out_ref, neurons_ref, integ_ref,
    *, phi, eps,
):
    inv_phi = 1.0 / phi

    def act(v):
        # phi-spiral activation; exact divide here for tight numerics on a
        # latency-bound (tiny) kernel.
        return jax.nn.sigmoid(v * inv_phi) * (v * phi) / (1.0 + jnp.abs(v))

    x = x_ref[...].astype(jnp.float32)

    # input_transform (256 -> 49) + phi activation; dropout = identity (eval).
    h = act(
        jnp.dot(x, w_in_ref[...], preferred_element_type=jnp.float32)
        + b_in_ref[...]
    )

    # The seven 49->7 sacred neurons + concat == one 49->49 matmul with the
    # weights stacked along the output dimension.
    n7 = act(
        jnp.dot(h, w7_ref[...], preferred_element_type=jnp.float32)
        + b7_ref[...]
    )
    neurons_ref[...] = n7.astype(neurons_ref.dtype)

    # integration_layer (49 -> 21) + phi activation.
    integ = act(
        jnp.dot(n7, w_int_ref[...], preferred_element_type=jnp.float32)
        + b_int_ref[...]
    )

    # LayerNorm(21).
    mu = jnp.mean(integ, axis=-1, keepdims=True)
    var = jnp.mean(jnp.square(integ - mu), axis=-1, keepdims=True)
    normed = (integ - mu) * jax.lax.rsqrt(var + eps) * gamma_ref[...] + beta_ref[...]
    integ_ref[...] = normed.astype(integ_ref.dtype)

    # output_layer (21 -> 4); second dropout is also identity in eval mode.
    out_ref[...] = (
        jnp.dot(normed, w_out_ref[...], preferred_element_type=jnp.float32)
        + b_out_ref[...]
    ).astype(out_ref.dtype)


def seven_sacred_neurons_forward(params, x: jax.Array, phi: float = PHI):
    """Fused forward pass. Returns (output, neuron_activations dict)."""
    batch = x.shape[0]
    out_dim = params["w_out"].shape[0]

    kernel = functools.partial(_sacred_forward_kernel, phi=float(phi), eps=LN_EPS)

    out, neurons, integrated = pl.pallas_call(
        kernel,
        out_shape=(
            jax.ShapeDtypeStruct((batch, out_dim), x.dtype),
            jax.ShapeDtypeStruct((batch, 49), x.dtype),
            jax.ShapeDtypeStruct((batch, 21), x.dtype),
        ),
    )(
        x,
        params["w_in"].T, params["b_in"].reshape(1, -1),
        params["w7"].T, params["b7"].reshape(1, -1),
        params["w_int"].T, params["b_int"].reshape(1, -1),
        params["gamma"].reshape(1, -1), params["beta"].reshape(1, -1),
        params["w_out"].T, params["b_out"].reshape(1, -1),
    )

    acts = {
        name: neurons[:, 7 * i: 7 * (i + 1)] for i, name in enumerate(_NEURON_NAMES)
    }
    acts["integrated"] = integrated
    return out, acts


# ---------------------------------------------------------------------------
# Fibonacci-style parameter init (mirrors FibonacciLinear._fibonacci_init)
# ---------------------------------------------------------------------------

def _fibonacci_ratios(n: int) -> jnp.ndarray:
    fib = [1.0, 1.0]
    while len(fib) < max(n, 2):
        fib.append(fib[-1] + fib[-2])
    return jnp.asarray(
        [fib[i] / fib[i + 1] for i in range(len(fib) - 1)], dtype=jnp.float32
    )


def _fibonacci_linear(key, in_features: int, out_features: int):
    ratios = _fibonacci_ratios(max(in_features, out_features))
    n_ratios = ratios.shape[0]
    i = jnp.arange(out_features)[:, None]
    j = jnp.arange(in_features)[None, :]
    idx = (i + j) % n_ratios
    kw, kb = jax.random.split(key)
    w = ratios[idx] * jax.random.normal(
        kw, (out_features, in_features), dtype=jnp.float32) * 0.1
    b = jax.random.uniform(
        kb, (out_features,), minval=-0.1618, maxval=0.1618, dtype=jnp.float32)
    return w, b


def init_seven_sacred_neurons(key, input_dim: int = 256, output_dim: int = 4):
    keys = jax.random.split(key, 10)
    w_in, b_in = _fibonacci_linear(keys[0], input_dim, 49)
    neuron_ws, neuron_bs = [], []
    for i in range(7):
        w, b = _fibonacci_linear(keys[1 + i], 49, 7)
        neuron_ws.append(w)
        neuron_bs.append(b)
    w7 = jnp.concatenate(neuron_ws, axis=0)          # (49, 49)
    b7 = jnp.concatenate(neuron_bs, axis=0)          # (49,)
    w_int, b_int = _fibonacci_linear(keys[8], 49, 21)
    w_out, b_out = _fibonacci_linear(keys[9], 21, output_dim)
    return {
        "w_in": w_in, "b_in": b_in,
        "w7": w7, "b7": b7,
        "w_int": w_int, "b_int": b_int,
        "gamma": jnp.ones((21,), jnp.float32),
        "beta": jnp.zeros((21,), jnp.float32),
        "w_out": w_out, "b_out": b_out,
    }


# ---------------------------------------------------------------------------
# Pure-JAX reference for correctness checking
# ---------------------------------------------------------------------------

def _reference_forward(params, x, phi: float = PHI):
    def act(v):
        return jax.nn.sigmoid(v / phi) * (v * phi) / (1.0 + jnp.abs(v))

    def lin(v, w, b):
        return jnp.dot(v, w.T, precision=jax.lax.Precision.HIGHEST) + b

    h = act(lin(x, params["w_in"], params["b_in"]))
    n7 = act(lin(h, params["w7"], params["b7"]))
    integ = act(lin(n7, params["w_int"], params["b_int"]))
    mu = integ.mean(-1, keepdims=True)
    var = ((integ - mu) ** 2).mean(-1, keepdims=True)
    normed = (integ - mu) / jnp.sqrt(var + LN_EPS) * params["gamma"] + params["beta"]
    out = lin(normed, params["w_out"], params["b_out"])
    return out, n7, normed


# ---------------------------------------------------------------------------
# Self-test
# ---------------------------------------------------------------------------

if __name__ == "__main__":
    key = jax.random.PRNGKey(0)
    k_act, k_x, k_params = jax.random.split(key, 3)

    # 1) standalone phi-spiral activation kernel (small demo shape; the
    #    wrapper hits the no-pad, single-tile path here).
    x_act = jax.random.normal(k_act, (2, 4, 16, 16), dtype=jnp.float32)
    y = jax.block_until_ready(phi_spiral_activation(x_act))
    y_ref = _phi_spiral_reference(x_act)
    assert y.shape == x_act.shape and y.dtype == x_act.dtype
    # approx=True reciprocal loosens numerics to ~1e-3 relative.
    assert jnp.allclose(y, y_ref, atol=2e-3, rtol=2e-3), "activation mismatch"

    # 2) full SevenSacredNeurons forward: batch=21, input_dim=256 (from the
    #    SacredNeuronConfig defaults).
    params = init_seven_sacred_neurons(k_params, input_dim=256, output_dim=4)
    x = jax.random.normal(k_x, (21, 256), dtype=jnp.float32)
    out, acts = seven_sacred_neurons_forward(params, x)
    out = jax.block_until_ready(out)

    ref_out, ref_n7, ref_integrated = _reference_forward(params, x)
    assert out.shape == (21, 4)
    n7 = jnp.concatenate([acts[n] for n in _NEURON_NAMES], axis=1)
    assert jnp.allclose(out, ref_out, atol=2e-2, rtol=2e-2), "output mismatch"
    assert jnp.allclose(n7, ref_n7, atol=2e-2, rtol=2e-2), "neuron mismatch"
    assert jnp.allclose(
        acts["integrated"], ref_integrated, atol=2e-2, rtol=2e-2
    ), "integrated mismatch"

    print("KERNEL_OK")
</pallas_src>

<mosaic_0001>
module attributes {stable_mosaic.version = 11 : i64} {
  func.func @_phi_spiral_kernel(%arg0: i32, %arg1: memref<16x128xf32, #tpu.memory_space<vmem>>, %arg2: memref<16x128xf32, #tpu.memory_space<vmem>>) attributes {dimension_semantics = [#tpu.dimension_semantics<parallel>], iteration_bounds = array<i64: 1>, scalar_prefetch = 0 : i64, scratch_operands = 0 : i64, tpu.core_type = #tpu.core_type<tc>, window_params = [{transform_indices = @transform_0, window_bounds = array<i64: 16, 128>}, {transform_indices = @transform_1, window_bounds = array<i64: 16, 128>}]} {
    %c0 = arith.constant 0 : index
    %c0_0 = arith.constant 0 : index
    %0 = vector.load %arg1[%c0, %c0_0] : memref<16x128xf32, #tpu.memory_space<vmem>>, vector<16x128xf32>
    %cst = arith.constant 6.180340e-01 : f32
    %1 = vector.broadcast %cst : f32 to vector<16x128xf32>
    %2 = arith.mulf %0, %1 : vector<16x128xf32>
    %3 = arith.negf %2 : vector<16x128xf32>
    %4 = math.exp %3 : vector<16x128xf32>
    %cst_1 = arith.constant 1.000000e+00 : f32
    %5 = vector.broadcast %cst_1 : f32 to vector<16x128xf32>
    %6 = arith.addf %5, %4 : vector<16x128xf32>
    %7 = arith.divf %5, %6 : vector<16x128xf32>
    %cst_2 = arith.constant 1.61803401 : f32
    %8 = vector.broadcast %cst_2 : f32 to vector<16x128xf32>
    %9 = arith.mulf %0, %8 : vector<16x128xf32>
    %10 = math.absf %0 : vector<16x128xf32>
    %cst_3 = arith.constant 1.000000e+00 : f32
    %11 = vector.broadcast %cst_3 : f32 to vector<16x128xf32>
    %12 = arith.addf %11, %10 : vector<16x128xf32>
    %13 = tpu.reciprocal %12 {approx = true} : vector<16x128xf32> -> vector<16x128xf32>
    %14 = arith.mulf %9, %13 : vector<16x128xf32>
    %15 = arith.mulf %7, %14 : vector<16x128xf32>
    %c0_4 = arith.constant 0 : index
    %c0_5 = arith.constant 0 : index
    %16 = vector.load %arg2[%c0_4, %c0_5] : memref<16x128xf32, #tpu.memory_space<vmem>>, vector<16x128xf32>
    tpu.vector_store %arg2[%c0_4, %c0_5], %15 {strides = array<i32>} : memref<16x128xf32, #tpu.memory_space<vmem>>, vector<16x128xf32>,
    return
  }
  func.func @transform_0(%arg0: i32) -> (i32, i32) {
    %c0_i32 = arith.constant 0 : i32
    %c0_i32_0 = arith.constant 0 : i32
    return %arg0, %c0_i32 : i32, i32
  }
  func.func @transform_1(%arg0: i32) -> (i32, i32) {
    %c0_i32 = arith.constant 0 : i32
    %c0_i32_0 = arith.constant 0 : i32
    return %arg0, %c0_i32 : i32, i32
  }
}

</mosaic_0001>

<bundles_post_ra>
// kernel: tpu_custom_call.1
= control target key start
LH: loop header
LB: loop body
LE: loop exit
PB: predicated region body
PF: predicated region fallthrough
CT: control target
= control target key end

     0   :  { %6 = vsyncpa [#allocation3], 0  ;;  %s158_s0 = inlined_call_operand.hbm [shape: f32[16,128], index: 0, kind: input, shape index: {}]   ;;  %s159_s1 = inlined_call_operand.hbm [shape: f32[16,128], index: 1, kind: output, shape index: {}]  }
   0x1   :  { %7 = vsyncpa [#allocation4], 0  ;;  %s132_s6 = smov [#allocation2]  }
   0x2   :  { %s13_s7 = sshll.u32 %s132_s6, 4  ;;  %s14_s7 = int_to_ptr.vmem [resolvable:$true] %s13_s7 }
   0x3   :  { %s96_s8 = scalar_lea.vmem %s14_s7, 256  ;;  %p101_p1 = scmp.lt.s32.totalorder %s14_s7, %s14_s7 }
   0x4   :  { %p97_p0 = scmp.ne.s32.totalorder %s14_s7, %s96_s8  ;;  %p102_p2 = scmp.lt.s32.totalorder %s96_s8, %s96_s8 }
   0x6   :  { %p103_p3 = por %p102_p2, %p101_p1 }
   0x8   :  { %p104_p4 = pnand %p103_p3, %p97_p0 }
   0xa   :  { %107 = shalt.err (!%p104_p4)
}
   0xb   :  { %s133_s9 = smov 128   ;;  %s134_s10 = smov 8  }
   0xc   :  { %19 = dma.hbm_to_vmem [thread:$0]  %s158_s0, 256, %s14_s7, [#allocation3], %s133_s9, %s133_s9, %s134_s10  }
   0xd   :  { %128 = dma.done.wait [#allocation3], 256  }
   0xe   :  { %129 = vsyncadd [#allocation3], 4294967040  ;;  %v23_v0 = vld [vmem:[#allocation2] sm:$0xff]  ;;  %v24_v1 = vld [vmem:[#allocation2 + $0x8] sm:$0xff]  ;;  %s135_s0 = smov [#allocation5]  }
   0xf   :  { %v70_v2 = vmul.f32 -0.618034, %v23_v0  ;;  %v71_v3 = vmul.f32 -0.618034, %v24_v1  ;;  %v41_v6 = vand.u32 2147483647, %v23_v0 }
  0x10   :  { %v42_v7 = vand.u32 2147483647, %v24_v1  ;;  %v39_v14 = vmul.f32 1.618034, %v23_v0  ;;  %v40_v16 = vmul.f32 1.618034, %v24_v1 }
  0x11   :  { %v29_v4 = vmul.f32 1.442695, %v70_v2  ;;  %v31_v5 = vmul.f32 1.442695, %v71_v3  ;;  %v43_v8 = vadd.f32 1.0, %v41_v6  ;;  %s58_s13 = sshll.u32 %s135_s0, 4  ;;  %s59_s13 = int_to_ptr.vmem [resolvable:$true] %s58_s13 }
  0x12   :  { %v44_v9 = vadd.f32 1.0, %v42_v7  ;;  %s108_s14 = scalar_lea.vmem %s59_s13, 256  ;;  %p113_p6 = scmp.lt.s32.totalorder %s59_s13, %s59_s13 }
  0x13   :  { %76 = vpow2.f32 %v29_v4  ;;  %p109_p5 = scmp.ne.s32.totalorder %s59_s13, %s108_s14  ;;  %p114_p7 = scmp.lt.s32.totalorder %s108_s14, %s108_s14 }
  0x14   :  { %78 = vpow2.f32 %v31_v5 }
  0x15   :  { %80 = vrcp.f32 %v43_v8  ;;  %p115_p8 = por %p114_p7, %p113_p6 }
  0x16   :  { %82 = vrcp.f32 %v44_v9 }
  0x17   :  { %p116_p9 = pnand %p115_p8, %p109_p5 }
  0x20   :  { %v77_v10 = vpop.eup %76 }
  0x21   :  { %v33_v11 = vadd.f32 1.0, %v77_v10  ;;  %v79_v12 = vpop.eup %78 }
  0x22   :  { %v34_v13 = vadd.f32 1.0, %v79_v12  ;;  %v81_v15 = vpop.eup %80 }
  0x23   :  { %84 = vrcp.f32 %v33_v11  ;;  %v83_v17 = vpop.eup %82  ;;  %v47_v18 = vmul.f32 %v81_v15, %v39_v14 }
  0x24   :  { %86 = vrcp.f32 %v34_v13  ;;  %v48_v19 = vmul.f32 %v83_v17, %v40_v16 }
  0x30   :  { %v85_v20 = vpop.eup %84 }
  0x31   :  { %v49_v21 = vmul.f32 %v85_v20, %v47_v18  ;;  %v87_v22 = vpop.eup %86 }
  0x32   :  { %v50_v23 = vmul.f32 %v87_v22, %v48_v19 }
  0x33   :  { %51 = vst [vmem:[#allocation5] sm:$0xff] %v49_v21 }
  0x34   :  { %52 = vst [vmem:[#allocation5 + $0x8] sm:$0xff] %v50_v23 }
  0x35   :  { %119 = shalt.err (!%p116_p9)
}
  0x36   :  { %64 = dma.vmem_to_hbm [thread:$0]  %s59_s13, 256, %s159_s1, [#allocation4], %s133_s9, %s133_s9, %s134_s10  }
  0x37   :  { %130 = dma.done.wait [#allocation4], 256  }
  0x38   :  { %131 = vsyncadd [#allocation4], 4294967040 }
  0x39   :  { %68 = vsyncpa [#allocation3], 1 }
  0x3a   :  { %69 = vsyncpa [#allocation4], 1 }

</bundles_post_ra>
